<compile_context>
chip_gen: v5e
topology: v5e:2x2
jax: 0.10.0
libtpu: 0.0.40
codegen_flags: <defaults>
</compile_context>

<pallas_src>
import functools
import math

import jax
import jax.numpy as jnp
from jax import lax
from jax.experimental import pallas as pl
from jax.experimental.pallas import tpu as pltpu


# ---------------------------------------------------------------------------
# PE buffer construction (host-side, mirrors the PyTorch register_buffer init)
# ---------------------------------------------------------------------------
def _build_pe(seq_len: int, d_model: int) -> jnp.ndarray:
    position = jnp.arange(seq_len, dtype=jnp.float32)[:, None]               # (S, 1)
    div_term = jnp.exp(jnp.arange(0, d_model, 2, dtype=jnp.float32)
                       * (-math.log(10000.0) / d_model))                     # (D/2,)
    angles = position * div_term                                             # (S, D/2)
    pe = jnp.zeros((seq_len, d_model), jnp.float32)
    pe = pe.at[:, 0::2].set(jnp.sin(angles))
    pe = pe.at[:, 1::2].set(jnp.cos(angles))
    return pe


# ---------------------------------------------------------------------------
# Fused kernel: add positional encoding + inverted dropout
# ---------------------------------------------------------------------------
def _pe_dropout_kernel(seed_ref, x_ref, pe_ref, o_ref, *,
                       p: float, seq_len: int, block_s: int, train: bool):
    # x_ref: (1, block_s, D)  pe_ref: (block_s, D)
    y = x_ref[0] + pe_ref[...]
    if train and p > 0.0:
        d_model = y.shape[-1]
        b = pl.program_id(0)
        row0 = pl.program_id(1) * block_s
        rows = lax.broadcasted_iota(jnp.int32, y.shape, 0) + row0
        cols = lax.broadcasted_iota(jnp.int32, y.shape, 1)
        gidx = (b * seq_len + rows) * d_model + cols          # unique per element
        # splitmix32-style mixer keyed on (seed, element index); pure jnp integer ops.
        h = gidx.astype(jnp.uint32) + seed_ref[0].astype(jnp.uint32) * jnp.uint32(0x9E3779B1)
        h = h ^ (h >> 16)
        h = h * jnp.uint32(0x7FEB352D)
        h = h ^ (h >> 15)
        h = h * jnp.uint32(0x846CA68B)
        h = h ^ (h >> 16)
        # Integer-threshold mask: P(h_as_i32 < thr) == p  (no float conversion).
        thr = jnp.int32(int(round(p * 4294967296.0)) - 2147483648)
        keep = h.astype(jnp.int32) >= thr
        y = jnp.where(keep, y * (1.0 / (1.0 - p)), jnp.zeros_like(y))
    o_ref[0] = y.astype(o_ref.dtype)


def _pick_block_s(seq: int, d_model: int, itemsize: int,
                  tile_bytes: int = 2 << 20) -> int:
    """Largest divisor of seq that (a) is seq or a multiple of 8 (tiling rule) and
    (b) keeps one (block_s, D) tile under ~2 MiB so double-buffered x/pe/out fit the
    default scoped VMEM limit on all TPU generations."""
    legal = [d for d in range(1, seq + 1) if seq % d == 0 and (d == seq or d % 8 == 0)]
    fitting = [d for d in legal if d * d_model * itemsize <= tile_bytes]
    return max(fitting) if fitting else min(legal)


def positional_encoding_fwd(x, pe, seed, p, *, training=True):
    B, S, D = x.shape
    assert pe.shape == (S, D)
    block_s = _pick_block_s(S, D, jnp.dtype(x.dtype).itemsize)
    grid = (B, S // block_s)
    kernel = functools.partial(_pe_dropout_kernel, p=float(p), seq_len=S,
                               block_s=block_s, train=bool(training))
    return pl.pallas_call(
        kernel,
        out_shape=jax.ShapeDtypeStruct((B, S, D), x.dtype),
        grid=grid,
        in_specs=[
            pl.BlockSpec(memory_space=pltpu.MemorySpace.SMEM),          # seed (1,) scalar
            pl.BlockSpec((1, block_s, D), lambda b, j: (b, j, 0)),      # x tile
            pl.BlockSpec((block_s, D), lambda b, j: (j, 0)),            # pe tile
        ],
        out_specs=pl.BlockSpec((1, block_s, D), lambda b, j: (b, j, 0)),
        compiler_params=pltpu.CompilerParams(
            dimension_semantics=("parallel", "parallel")),
    )(seed, x, pe)


# ---------------------------------------------------------------------------
# Module wrapper
# ---------------------------------------------------------------------------
class PositionalEncoding:
    def __init__(self, d_model: int, seq_len: int, dropout: float, seed: int = 0):
        self.d_model = d_model
        self.seq_len = seq_len
        self.p = float(dropout)
        self.seed = int(seed)
        self.pe = _build_pe(seq_len, d_model)       # (seq_len, d_model) f32 buffer

    def __call__(self, x, *, training=True):
        B, S, D = x.shape
        assert D == self.d_model and S <= self.seq_len
        pe = self.pe[:S].astype(x.dtype)
        p = self.p if training else 0.0
        seed = jnp.array([self.seed], jnp.int32)
        return positional_encoding_fwd(x, pe, seed, p, training=training)


# ---------------------------------------------------------------------------
if __name__ == "__main__":
    key = jax.random.PRNGKey(0)
    B, S, D = 2, 16, 128                       # small, lane-dense (D multiple of 128)
    x = jax.random.normal(key, (B, S, D), dtype=jnp.float32)

    mod = PositionalEncoding(d_model=D, seq_len=S, dropout=0.1, seed=0)

    # Eval mode (dropout = identity): exact reference check.
    out_eval = jax.block_until_ready(mod(x, training=False))
    ref = x + mod.pe[None, :S, :]
    assert out_eval.shape == x.shape and out_eval.dtype == x.dtype
    assert jnp.allclose(out_eval, ref, atol=1e-5, rtol=1e-5), "eval-mode mismatch"

    # Training mode: every element is either 0 (dropped) or ref/(1-p) (kept, rescaled).
    p = 0.1
    out_train = jax.block_until_ready(mod(x, training=True))
    assert out_train.shape == x.shape and out_train.dtype == x.dtype
    scaled = ref * (1.0 / (1.0 - p))
    ok = jnp.where(out_train == 0.0, True,
                   jnp.isclose(out_train, scaled, atol=1e-4, rtol=1e-4))
    assert bool(jnp.all(ok)), "training-mode values not in {0, ref/(1-p)}"
    drop_frac = float(jnp.mean((out_train == 0.0).astype(jnp.float32)))
    assert 0.02 <= drop_frac <= 0.25, f"dropout fraction {drop_frac} far from p={p}"

    print("KERNEL_OK")
</pallas_src>

<mosaic_0001>
module attributes {stable_mosaic.version = 11 : i64} {
  func.func @_pe_dropout_kernel(%arg0: i32, %arg1: i32, %arg2: memref<1xi32, #tpu.memory_space<smem>>, %arg3: memref<1x16x128xf32, #tpu.memory_space<vmem>>, %arg4: memref<16x128xf32, #tpu.memory_space<vmem>>, %arg5: memref<1x16x128xf32, #tpu.memory_space<vmem>>) attributes {dimension_semantics = [#tpu.dimension_semantics<parallel>, #tpu.dimension_semantics<parallel>], iteration_bounds = array<i64: 2, 1>, scalar_prefetch = 0 : i64, scratch_operands = 0 : i64, tpu.core_type = #tpu.core_type<tc>, window_params = [{transform_indices = @transform_0, window_bounds = array<i64: 1>}, {transform_indices = @transform_1, window_bounds = array<i64: 1, 16, 128>}, {transform_indices = @transform_2, window_bounds = array<i64: 16, 128>}, {transform_indices = @transform_3, window_bounds = array<i64: 1, 16, 128>}]} {
    %c0 = arith.constant 0 : index
    %c0_0 = arith.constant 0 : index
    %c0_1 = arith.constant 0 : index
    %0 = vector.load %arg3[%c0, %c0_0, %c0_1] : memref<1x16x128xf32, #tpu.memory_space<vmem>>, vector<1x16x128xf32>
    %1 = vector.shape_cast %0 : vector<1x16x128xf32> to vector<16x128xf32>
    %c0_2 = arith.constant 0 : index
    %c0_3 = arith.constant 0 : index
    %2 = vector.load %arg4[%c0_2, %c0_3] : memref<16x128xf32, #tpu.memory_space<vmem>>, vector<16x128xf32>
    %3 = arith.addf %1, %2 : vector<16x128xf32>
    %c0_4 = arith.constant 0 : index
    %c0_5 = arith.constant 0 : index
    %c0_6 = arith.constant 0 : index
    %4 = vector.load %arg5[%c0_4, %c0_5, %c0_6] : memref<1x16x128xf32, #tpu.memory_space<vmem>>, vector<1x16x128xf32>
    %5 = vector.shape_cast %4 : vector<1x16x128xf32> to vector<16x128xf32>
    %6 = vector.shape_cast %3 : vector<16x128xf32> to vector<1x16x128xf32>
    tpu.vector_store %arg5[%c0_4, %c0_5, %c0_6], %6 {strides = array<i32>} : memref<1x16x128xf32, #tpu.memory_space<vmem>>, vector<1x16x128xf32>,
    return
  }
  func.func @transform_0(%arg0: i32, %arg1: i32) -> i32 {
    %c0_i32 = arith.constant 0 : i32
    %c0_i32_0 = arith.constant 0 : i32
    return %c0_i32 : i32
  }
  func.func @transform_1(%arg0: i32, %arg1: i32) -> (i32, i32, i32) {
    %c0_i32 = arith.constant 0 : i32
    %c0_i32_0 = arith.constant 0 : i32
    return %arg0, %arg1, %c0_i32 : i32, i32, i32
  }
  func.func @transform_2(%arg0: i32, %arg1: i32) -> (i32, i32) {
    %c0_i32 = arith.constant 0 : i32
    %c0_i32_0 = arith.constant 0 : i32
    return %arg1, %c0_i32 : i32, i32
  }
  func.func @transform_3(%arg0: i32, %arg1: i32) -> (i32, i32, i32) {
    %c0_i32 = arith.constant 0 : i32
    %c0_i32_0 = arith.constant 0 : i32
    return %arg0, %arg1, %c0_i32 : i32, i32, i32
  }
}

</mosaic_0001>

<bundles_post_ra>
// kernel: tpu_custom_call.1
= control target key start
LH: loop header
LB: loop body
LE: loop exit
PB: predicated region body
PF: predicated region fallthrough
CT: control target
= control target key end

     0   :  { %9 = vsyncpa [#allocation4], 0  ;;  %s787_s0 = inlined_call_operand.<no memory space> [shape: s32[1], index: 0, kind: input, shape index: {}]   ;;  %s788_s1 = inlined_call_operand.hbm [shape: f32[2,16,128], index: 1, kind: input, shape index: {}]   ;;  %s789_s2 = inlined_call_operand.hbm [shape: f32[16,128], index: 2, kind: input, shape index: {}]   ;;  %s790_s3 = inlined_call_operand.hbm [shape: f32[2,16,128], index: 3, kind: output, shape index: {}]  }
   0x1   :  { %11 = vsyncpa [#allocation4 + $0x1], 0 }
   0x2   :  { %12 = vsyncpa [#allocation7], 0 }
   0x3   :  { %13 = vsyncpa [#allocation5], 0 }
   0x4   :  { %15 = vsyncpa [#allocation5 + $0x1], 0  ;;  %s632_s12 = smov 0   ;;  %s634_s13 = smov 0  }
   0x5   :  { %s636_s14 = smov 0   ;;  %s638_s0 = smov 0  }
   0x6   :  { %s640_s15 = smov 0   ;;  %s642_s16 = smov 0  }
   0x7 LB: > { %s363_s17 = sadd.s32 4294967295, %s605_s16   ;;  %s364_s18 = sadd.s32 4294967294, %s605_s16   ;;  %s605_s16 = sphi %s642_s16, %s21_s16   ;;  %s601_s15 = sphi %s640_s15, %s802_s15   ;;  %s597_s0 = sphi %s638_s0, %s801_s0   ;;  %s593_s14 = sphi %s636_s14, %s800_s14   ;;  %s589_s13 = sphi %s634_s13, %s799_s13   ;;  %s585_s12 = sphi %s632_s12, %s798_s12  }
   0x8   : > { %p76_p0 = scmp.ne.s32.totalorder %s589_s13, %s585_s12  ;;  %p666_p1 = scmp.eq.s32.totalorder %s363_s17, 0 }
   0x9   : > { %p670_p2 = scmp.eq.s32.totalorder %s363_s17, 1  ;;  %p134_p3 = scmp.eq.s32.totalorder %s364_s18, 1 }
   0xa   : > { %p676_p4 = por %p666_p1, %p76_p0  ;;  %p365_p5 = scmp.ge.s32.totalorder %s605_s16, 1 }
   0xb   : > { %p681_p6 = por %p134_p3, %p76_p0  ;;  %p141_p7 = scmp.lt.s32.totalorder %s605_s16, 3 }
   0xc   : > { %s158_s25 = sshll.u32 %s789_s2, 4  ;;  %s607_s27 = smov [#allocation6]   ;;  %s159_s25 = int_to_ptr.hbm [resolvable:$true] %s158_s25 }
   0xd   : > { %p689_p8 = pnand %p365_p5, %p141_p7  ;;  %s160_s28 = sshll.u32 %s607_s27, 4  ;;  %s161_s28 = int_to_ptr.vmem [resolvable:$true] %s160_s28 }
   0xe   : > { %p367_p11 = scmp.ge.s32.totalorder %s605_s16, 2  ;;  %s608_s29 = smov 128  }
   0xf   : > { %p390_p9 = pneg %p689_p8  ;;  %s609_s30 = smov 8  }
  0x10   : > { %s33_s4 = sadd.s32 1, %s601_s15  ;;  %s63_s5 = sadd.s32 1, %s593_s14 }
  0x11   : > { %p391_p10 = pnand %p390_p9, %p666_p1  ;;  %p35_p12 = scmp.ge.s32.totalorder %s33_s4, 2 }
  0x12   : > { %p70_p13 = scmp.ne.s32.totalorder %s593_s14, %s589_s13  ;;  %p71_p0 = scmp.eq.s32.totalorder %s605_s16, 0 }
  0x13   : > { %393 = dma.hbm_to_vmem [thread:$0]  (!%p391_p10), %s159_s25, 256, %s161_s28, [#allocation7], %s608_s29, %s608_s29, %s609_s30  }
  0x14   : > { %s804_s4 = smov (%p35_p12, %s33_s4), 0  ;;  %p708_p3 = por %p71_p0, %p70_p13 }
  0x15   : > { %p714_p5 = por %p670_p2, %p70_p13  ;;  %s58_s8 = ssub.s32 %s601_s15, %s804_s4 }
  0x16   : > { %p403_p7 = scmp.lt.s32.totalorder %s605_s16, 2  ;;  %p61_p9 = scmp.eq.s32.totalorder %s58_s8, 0 }
  0x17   : > { %s174_s9 = sand.u32 1, %s593_s14   ;;  %s380_s17 = sshll.u32 %s601_s15, 4 }
  0x18   : > { %s368_s10 = sshll.u32 %s174_s9, 4  ;;  %s185_s24 = scalar_lea.hbm %s788_s1, %s380_s17 }
  0x19   : > { %s723_s11 = scalar_select %p61_p9, %s593_s14, %s63_s5  }
  0x1a   : > { %s178_s25 = scalar_lea.vmem [#allocation3], %s368_s10  ;;  %s186_s20 = sshll.u32 %s185_s24, 4  ;;  %s187_s20 = int_to_ptr.hbm [resolvable:$true] %s186_s20 }
  0x1b   : > { %s188_s27 = sshll.u32 %s178_s25, 4  ;;  %p395_p2 = pnand %p403_p7, %p708_p3  ;;  %s189_s27 = int_to_ptr.vmem [resolvable:$true] %s188_s27 }
  0x1c   : > { %s175_s28 = scalar_lea.sflag [#allocation4], %s174_s9  ;;  %200 = sbr.rel (%p689_p8) target bundleno = 52 (0x34), region = 32 }
  0x1d   : > { %397 = dma.hbm_to_vmem [thread:$0]  (!%p395_p2), %s187_s20, 256, %s189_s27, %s175_s28, %s608_s29, %s608_s29, %s609_s30  }
  0x1e   : > { %s737_s5 = sand.u32 (!%p689_p8), 1, %s589_s13  }
  0x1f   : > { %s372_s8 = sshll.u32 (!%p689_p8), %s737_s5, 4  ;;  %s203_s10 = scalar_lea.sflag (!%p689_p8), [#allocation4], %s737_s5 }
  0x20   : > { %s206_s17 = scalar_lea.vmem (!%p689_p8), [#allocation3], %s372_s8 }
  0x21   : > { %572 = dma.done.wait (%p676_p4), %s203_s10, 256  }
  0x22   : > { %574 = vsyncadd (%p676_p4), %s203_s10, 4294967040 }
  0x23   : > { %576 = dma.done.wait (%p666_p1), [#allocation7], 256  }
  0x24   : > { %578 = vsyncadd (%p666_p1), [#allocation7], 4294967040  ;;  %s381_s26 = sshll.u32 %s597_s0, 4  ;;  %s234_s9 = scalar_lea.vmem [#allocation8], %s372_s8  ;;  %v238_v0 = vld [vmem:[%s206_s17] sm:$0xff]  ;;  %v239_v2 = vld [vmem:[%s206_s17 + $0x8] sm:$0xff] }
  0x25   : > { %s260_s6 = scalar_lea.hbm %s790_s3, %s381_s26  ;;  %s261_s18 = sshll.u32 %s234_s9, 4  ;;  %v240_v1 = vld [vmem:[#allocation6] sm:$0xff]  ;;  %v241_v4 = vld [vmem:[#allocation6 + $0x8] sm:$0xff]  ;;  %s262_s18 = int_to_ptr.vmem [resolvable:$true] %s261_s18 }
  0x26   : > { %s263_s23 = sshll.u32 %s260_s6, 4  ;;  %v242_v3 = vadd.f32 %v240_v1, %v238_v0  ;;  %v243_v5 = vadd.f32 %v241_v4, %v239_v2  ;;  %s247_s19 = scalar_lea.sflag [#allocation5], %s737_s5  ;;  %s264_s23 = int_to_ptr.hbm [resolvable:$true] %s263_s23 }
  0x27   : > { %s533_s0 = sshra.s32 %s264_s23, 4  ;;  %s539_s27 = scalar_lea.hbm %s790_s3, 32  ;;  %s534_s0 = int_to_ptr.hbm [resolvable:$true] %s533_s0 }
  0x28   : > { %244 = vst [vmem:[%s234_s9] sm:$0xff] %v242_v3  ;;  %s535_s21 = scalar_lea.hbm %s534_s0, 16  ;;  %p540_p10 = scmp.lt.s32.totalorder %s534_s0, %s790_s3 }
  0x29   : > { %245 = vst [vmem:[%s234_s9 + $0x8] sm:$0xff] %v243_v5  ;;  %p536_p1 = scmp.ne.s32.totalorder %s534_s0, %s535_s21  ;;  %p541_p12 = scmp.lt.s32.totalorder %s539_s27, %s535_s21 }
  0x2b   : > { %p537_p4 = pnand %p536_p1, %p714_p5  ;;  %p542_p13 = por %p541_p12, %p540_p10 }
  0x2d   : > { %p538_p8 = pneg %p537_p4 }
  0x2f   : > { %p543_p0 = pnand %p542_p13, %p538_p8 }
  0x31   : > { %546 = shalt.err (!%p543_p0)
}
  0x32   : > { %s610_s5 = smov 128   ;;  %s611_s8 = smov 8  }
  0x33   : > { %388 = dma.vmem_to_hbm [thread:$0]  (%p714_p5), %s262_s18, 256, %s264_s23, %s247_s19, %s610_s5, %s610_s5, %s611_s8  }
  0x34 PF: > { %s278_s10 = sand.u32 1, %s585_s12   ;;  %p399_p3 = pnand %p367_p11, %p681_p6 }
  0x35   : > { %s279_s17 = scalar_lea.sflag [#allocation5], %s278_s10 }
  0x36   : > { %p400_p7 = pneg %p399_p3 }
  0x38   : > { %580 = dma.done.wait (%p400_p7), %s279_s17, 256  }
  0x39   : > { %582 = vsyncadd (%p400_p7), %s279_s17, 4294967040  ;;  %s21_s16 = sadd.s32 1, %s605_s16   ;;  %s798_s12 = smov %s589_s13 }
  0x3a   : > { %p18_p9 = scmp.ge.s32.totalorder %s21_s16, 4   ;;  %s799_s13 = smov %s593_s14 }
  0x3b   : > { %s800_s14 = smov %s723_s11  ;;  %s801_s0 = smov %s601_s15 }
  0x3c   : > { %s802_s15 = smov %s804_s4  ;;  %20 = sbr.rel (!%p18_p9) target bundleno = 7 (0x7), region = 82 }
  0x41   :  { %285 = vsyncpa [#allocation4], 1 }
  0x42   :  { %287 = vsyncpa [#allocation4 + $0x1], 1 }
  0x43   :  { %288 = vsyncpa [#allocation7], 1 }
  0x44   :  { %289 = vsyncpa [#allocation5], 1 }
  0x45   :  { %291 = vsyncpa [#allocation5 + $0x1], 1 }

</bundles_post_ra>
